<compile_context>
chip_gen: v7x
topology: tpu7x:2x2x1
jax: 0.10.0
libtpu: 0.0.40
codegen_flags: <defaults>
</compile_context>

<pallas_src>
import functools

import jax
import jax.numpy as jnp
from jax.experimental import pallas as pl
from jax.experimental.pallas import tpu as pltpu


def _trim_slice_kernel(x_ref, o_ref, *, data_width: int):
    # Static slice of the Ref view: only the kept rows/cols are read, then a
    # single store of the full output block.
    o_ref[...] = x_ref[:, :data_width, :data_width]


def _copy_kernel(x_ref, o_ref):
    # Aligned fast path: input block already equals the output block.
    o_ref[...] = x_ref[...]


def _sublane_multiple(dtype) -> int:
    # Sub-32-bit dtypes pack along sublanes: (8,128) for 4B, (16,128) for 2B,
    # (32,128) for 1B elements.
    itemsize = jnp.dtype(dtype).itemsize
    return {4: 8, 2: 16, 1: 32}.get(itemsize, 8)


def _round_up(x: int, m: int) -> int:
    return ((x + m - 1) // m) * m


def _vmem_budget_bytes():
    """Generation-aware usable-VMEM budget + explicit scoped limit."""
    capacity = None
    try:
        info = pltpu.get_tpu_info()
        capacity = int(getattr(info, "vmem_capacity_bytes", 0)) or None
    except Exception:
        capacity = None

    if capacity is not None and capacity <= 64 * (1 << 20):
        # v7x-class: 64 MiB physical VMEM per TensorCore -> stay small.
        budget = 20 * (1 << 20)
    else:
        # v5e / v6e: 128 MiB physical; raise past the 16 MiB scoped default.
        budget = 24 * (1 << 20)

    limit = budget + 8 * (1 << 20)
    if capacity is not None:
        limit = min(limit, capacity)
    return budget, limit


def _choose_batch(nc: int, b_cap: int) -> int:
    """Largest block size <= b_cap, preferring divisors of nc (no ragged last
    block) and an even grid count (clean 2-TC split on v7x)."""
    b_cap = max(1, min(nc, b_cap))
    divisors = [d for d in range(1, b_cap + 1) if nc % d == 0]
    if divisors:
        even_grid = [d for d in divisors if (nc // d) % 2 == 0]
        pool = even_grid if even_grid else divisors
        return max(pool)
    return b_cap


def trim(x: jax.Array, data_width: int) -> jax.Array:
    """Equivalent of Trim(data_width)(x) for NCHW input x."""
    N, C, H, W = x.shape
    dw = int(data_width)
    assert dw <= H and dw <= W, "data_width exceeds spatial dims"

    if dw == H and dw == W:
        # Nothing to trim.
        return x

    itemsize = jnp.dtype(x.dtype).itemsize
    NC = N * C

    # Flatten N*C (free, contiguous reshape) so one grid step handles many
    # independent (H, W) images.
    x2 = x.reshape(NC, H, W)

    # Block dims: last-two block dims must be multiples of (sub, 128) or equal
    # the full array dims.  Narrow each to the smallest legal bound of dw so
    # the HBM->VMEM DMA skips trimmed rows/cols where alignment allows.
    sub = _sublane_multiple(x.dtype)
    h_block = H if _round_up(dw, sub) >= H else _round_up(dw, sub)
    w_block = W if _round_up(dw, 128) >= W else _round_up(dw, 128)

    aligned = (h_block == dw) and (w_block == dw)

    # Per-image VMEM footprint using PADDED (sublane,128) tile sizes, x2 for
    # double buffering on both input and output.
    in_pad = _round_up(h_block, sub) * _round_up(w_block, 128)
    out_pad = _round_up(dw, sub) * _round_up(dw, 128)
    per_image = 2 * (in_pad + out_pad) * itemsize

    budget, vmem_limit = _vmem_budget_bytes()
    b_from_vmem = max(1, budget // max(per_image, 1))

    # Keep the grid at >= 4 steps when NC allows it so the pipeline (and the
    # v7x 2-TC split) stays active; each step should still be a large DMA.
    min_steps = min(4, NC)
    b_cap = min(b_from_vmem, pl.cdiv(NC, min_steps))
    b = _choose_batch(NC, b_cap)

    grid = (pl.cdiv(NC, b),)

    cost = pl.CostEstimate(
        flops=0,
        transcendentals=0,
        bytes_accessed=NC * (h_block * w_block + dw * dw) * itemsize,
    )

    if aligned:
        kernel = _copy_kernel
    else:
        kernel = functools.partial(_trim_slice_kernel, data_width=dw)

    out2 = pl.pallas_call(
        kernel,
        out_shape=jax.ShapeDtypeStruct((NC, dw, dw), x.dtype),
        grid_spec=pltpu.PrefetchScalarGridSpec(
            num_scalar_prefetch=0,
            grid=grid,
            in_specs=[
                pl.BlockSpec((b, h_block, w_block), lambda i: (i, 0, 0)),
            ],
            out_specs=pl.BlockSpec((b, dw, dw), lambda i: (i, 0, 0)),
        ),
        compiler_params=pltpu.CompilerParams(
            dimension_semantics=("parallel",),
            vmem_limit_bytes=vmem_limit,
        ),
        cost_estimate=cost,
    )(x2)

    return out2.reshape(N, C, dw, dw)


if __name__ == "__main__":
    # Small shapes consistent with the module's forward: NCHW input.
    N, C, H, W = 2, 4, 16, 16
    data_width = 12

    key = jax.random.PRNGKey(0)
    x = jax.random.normal(key, (N, C, H, W), dtype=jnp.float32)

    out = trim(x, data_width)
    out = jax.block_until_ready(out)

    # Correctness check against plain-JAX reference slicing.
    ref = x[:, :, :data_width, :data_width]
    assert out.shape == (N, C, data_width, data_width), out.shape
    assert jnp.array_equal(out, ref), "Pallas trim output mismatch"

    print("KERNEL_OK")
</pallas_src>

<mosaic_0001>
module attributes {stable_mosaic.version = 11 : i64} {
  func.func @_trim_slice_kernel(%arg0: i32, %arg1: memref<2x16x16xf32, #tpu.memory_space<vmem>>, %arg2: memref<2x12x12xf32, #tpu.memory_space<vmem>>) attributes {dimension_semantics = [#tpu.dimension_semantics<parallel>], iteration_bounds = array<i64: 4>, scalar_prefetch = 0 : i64, scratch_operands = 0 : i64, tpu.core_type = #tpu.core_type<tc>, window_params = [{transform_indices = @transform_0, window_bounds = array<i64: 2, 16, 16>}, {transform_indices = @transform_1, window_bounds = array<i64: 2, 12, 12>}]} {
    %c0 = arith.constant 0 : index
    %c0_0 = arith.constant 0 : index
    %c0_1 = arith.constant 0 : index
    %0 = vector.load %arg1[%c0, %c0_0, %c0_1] : memref<2x16x16xf32, #tpu.memory_space<vmem>>, vector<2x12x12xf32>
    %c0_2 = arith.constant 0 : index
    %c0_3 = arith.constant 0 : index
    %c0_4 = arith.constant 0 : index
    %1 = vector.load %arg2[%c0_2, %c0_3, %c0_4] : memref<2x12x12xf32, #tpu.memory_space<vmem>>, vector<2x12x12xf32>
    tpu.vector_store %arg2[%c0_2, %c0_3, %c0_4], %0 {strides = array<i32>} : memref<2x12x12xf32, #tpu.memory_space<vmem>>, vector<2x12x12xf32>,
    return
  }
  func.func @transform_0(%arg0: i32) -> (i32, i32, i32) {
    %c0_i32 = arith.constant 0 : i32
    %c0_i32_0 = arith.constant 0 : i32
    %c0_i32_1 = arith.constant 0 : i32
    return %arg0, %c0_i32, %c0_i32_0 : i32, i32, i32
  }
  func.func @transform_1(%arg0: i32) -> (i32, i32, i32) {
    %c0_i32 = arith.constant 0 : i32
    %c0_i32_0 = arith.constant 0 : i32
    %c0_i32_1 = arith.constant 0 : i32
    return %arg0, %c0_i32, %c0_i32_0 : i32, i32, i32
  }
}

</mosaic_0001>

<bundles_post_ra>
// kernel: tpu_custom_call.1
= control target key start
LH: loop header
LB: loop body
LE: loop exit
PB: predicated region body
PF: predicated region fallthrough
CT: control target
= control target key end

     0   :  { %6 = vsyncpa [#allocation3], 0  ;;  %s466_s0 = inlined_call_operand.hbm [shape: f32[8,16,16], index: 0, kind: input, shape index: {}]   ;;  %s467_s1 = inlined_call_operand.vmem [shape: f32[8,12,12], index: 1, kind: output, shape index: {}]  }
   0x1   :  { %8 = vsyncpa [#allocation3 + $0x1], 0  ;;  %s359_s6 = smov 0   ;;  %s361_s7 = smov 0  }
   0x2   :  { %s363_s8 = smov 0   ;;  %s365_s9 = smov 0  }
   0x3 LB: > { %s221_s10 = sadd.s32 4294967295, %s344_s9   ;;  %s379_s11 = sadd.s32 1, %s344_s9   ;;  %s344_s9 = sphi %s365_s9, %s474_s9   ;;  %s340_s8 = sphi %s363_s8, %s473_s8   ;;  %s336_s7 = sphi %s361_s7, %s472_s7   ;;  %s332_s6 = sphi %s359_s6, %s471_s6  }
   0x4   : > { %s18_s12 = ssub.s32 %s344_s9, %s379_s11  ;;  %s21_s13 = sadd.s32 1, %s340_s8 }
   0x5   : > { %p19_p0 = scmp.eq.s32.totalorder %s18_s12, 0  ;;  %p28_p1 = scmp.ne.s32.totalorder %s340_s8, %s336_s7 }
   0x6   : > { %p29_p2 = scmp.eq.s32.totalorder %s344_s9, 0  ;;  %p34_p3 = scmp.ne.s32.totalorder %s336_s7, %s332_s6 }
   0x7   : > { %s389_s14 = scalar_select %p19_p0, %s340_s8, %s21_s13  }
   0x8   : > { %p30_p4 = por %p29_p2, %p28_p1  ;;  %p35_p5 = scmp.eq.s32.totalorder %s221_s10, 0 }
   0x9   : > { %p245_p6 = scmp.lt.s32.totalorder %s344_s9, 4  ;;  %s84_s16 = sand.u32 1, %s340_s8  }
   0xa   : > { %p394_p7 = por %p35_p5, %p34_p3  ;;  %s225_s17 = sshll.u32 %s84_s16, 5 }
   0xb   : > { %s237_s18 = sshll.u32 %s344_s9, 9  ;;  %s88_s22 = scalar_lea.vmem [#allocation2], %s225_s17 }
   0xc   : > { %s403_s21 = scalar_lea.hbm %s466_s0, %s237_s18  ;;  %s96_s23 = sshll.u32 %s88_s22, 4  ;;  %s405_s23 = int_to_ptr.vmem [resolvable:$true] %s96_s23 }
   0xd   : > { %p407_p8 = pnand %p245_p6, %p30_p4  ;;  %s412_s25 = scalar_lea.sflag [#allocation3], %s84_s16 }
   0xe   : > { %s280_s26 = scalar_lea.hbm %s403_s21, 512  ;;  %s285_s29 = scalar_lea.hbm %s466_s0, 2048 }
   0xf   : > { %p281_p10 = scmp.ne.s32.totalorder %s403_s21, %s280_s26  ;;  %p282_p11 = pneg %p407_p8 }
  0x10   : > { %p286_p0 = scmp.lt.u32.totalorder %s403_s21, %s466_s0  ;;  %p287_p1 = scmp.lt.u32.totalorder %s285_s29, %s280_s26 }
  0x11   : > { %p283_p12 = pnand %p282_p11, %p281_p10  ;;  %p289_p3 = scmp.lt.u32.totalorder %s280_s26, %s403_s21 }
  0x12   : > { %p288_p2 = por %p287_p1, %p286_p0 }
  0x13   : > { %p284_p13 = pneg %p283_p12 }
  0x14   : > { %p290_p4 = por %p289_p3, %p288_p2 }
  0x16   : > { %p291_p5 = pnand %p290_p4, %p284_p13 }
  0x18   : > { %294 = shalt.err (!%p291_p5)
}
  0x19   : > { %s295_s3 = scalar_lea.vmem %s405_s23, 512  ;;  %s346_s4 = smov [#allocation2]  }
  0x1a   : > { %p296_p6 = scmp.ne.s32.totalorder %s405_s23, %s295_s3  ;;  %s300_s5 = sshll.u32 %s346_s4, 4  ;;  %s301_s5 = int_to_ptr.vmem [resolvable:$false] %s300_s5 }
  0x1b   : > { %s302_s6 = scalar_lea.vmem %s301_s5, 1024  ;;  %p303_p9 = scmp.lt.s32.totalorder %s405_s23, %s301_s5 }
  0x1c   : > { %p298_p10 = pnand %p296_p6, %p282_p11  ;;  %p304_p0 = scmp.lt.s32.totalorder %s302_s6, %s295_s3 }
  0x1e   : > { %p299_p12 = pneg %p298_p10  ;;  %p305_p1 = por %p304_p0, %p303_p9 }
  0x20   : > { %p306_p2 = pnand %p305_p1, %p299_p12 }
  0x22   : > { %309 = shalt.err (!%p306_p2)
}
  0x23   : > { %s347_s12 = smov 128   ;;  %s348_s13 = smov 8  }
  0x24   : > { %244 = dma.hbm_to_vmem [thread:$0]  (!%p407_p8), %s403_s21, 512, %s405_s23, %s412_s25, %s347_s12, %s347_s12, %s348_s13  }
  0x25   : > { %p104_p11 = scmp.lt.s32.totalorder %s344_s9, 5  ;;  %p470_p13 = scmp.ge.s32.totalorder %s344_s9, 1 }
  0x27   : > { %p105_p3 = pnand %p470_p13, %p104_p11 }
  0x28   : > { %s110_s16 = sand.u32 (!%p105_p3), 1, %s336_s7  }
  0x29   : > { %108 = sbr.rel (%p105_p3) target bundleno = 57 (0x39), region = 24  ;;  %s230_s17 = sshll.u32 (!%p105_p3), %s110_s16, 5 }
  0x2a   : > { %s111_s18 = scalar_lea.sflag (!%p105_p3), [#allocation3], %s110_s16  ;;  %s114_s19 = scalar_lea.vmem (!%p105_p3), [#allocation2], %s230_s17 }
  0x30   : > { %327 = dma.done.wait (%p394_p7), %s111_s18, 512  }
  0x31   : > { %329 = vsyncadd (%p394_p7), %s111_s18, 4294966784  ;;  %s231_s20 = sshll.u32 %s221_s10, 1  ;;  %vm146_vm0 = vcmask 97280   ;;  %vm148_vm1 = vcmask 93184   ;;  %v142_v0 = vld [vmem:[%s114_s19] sm:$0xff]  ;;  %v144_v2 = vld [vmem:[%s114_s19 + $0x10] sm:$0xff] }
  0x32   : > { %p136_p9 = scmp.lt.s32.totalorder %s231_s20, 7  ;;  %v143_v1 = vld [vmem:[%s114_s19 + $0x8] sm:$0xf]  ;;  %v145_v3 = vld [vmem:[%s114_s19 + $0x18] sm:$0xf] }
  0x34   : > { %s476_s20 = smov (!%p136_p9, %s231_s20), 7 }
  0x35   : > { %s238_s21 = sshll.u32 %s476_s20, 4 }
  0x36   : > { %s140_s24 = scalar_lea.vmem %s467_s1, %s238_s21 }
  0x37   : > { %147 = vst.msk [vmem:[%s140_s24] sm:$0xff] %vm146_vm0, %v142_v0  ;;  %150 = vst.msk [vmem:[%s140_s24 + $0x10] sm:$0xff] %vm146_vm0, %v144_v2 }
  0x38   : > { %149 = vst.msk [vmem:[%s140_s24 + $0x8] sm:$0xf] %vm148_vm1, %v143_v1  ;;  %151 = vst.msk [vmem:[%s140_s24 + $0x18] sm:$0xf] %vm148_vm1, %v145_v3 }
  0x39 PF: > { %p11_p7 = scmp.ge.s32.totalorder %s379_s11, 6   ;;  %s471_s6 = smov %s336_s7 }
  0x3a   : > { %s472_s7 = smov %s340_s8  ;;  %s473_s8 = smov %s389_s14 }
  0x3b   : > { %s474_s9 = smov %s379_s11  ;;  %13 = sbr.rel (!%p11_p7) target bundleno = 3 (0x3), region = 64 }
  0x42   :  { %176 = vsyncpa [#allocation3], 1 }
  0x43   :  { %178 = vsyncpa [#allocation3 + $0x1], 1 }

</bundles_post_ra>
